<compile_context>
chip_gen: v7x
topology: tpu7x:2x2x1
jax: 0.10.0
libtpu: 0.0.40
codegen_flags: <defaults>
</compile_context>

<pallas_src>
import functools

import jax
import jax.numpy as jnp
from jax.experimental import pallas as pl
from jax.experimental.pallas import tpu as pltpu

LANE = 128        # pad every lane-axis feature dim to this
MAX_TILE_B = 256  # batch tile; 2x double-buffered (x + out) tiles << VMEM


def _round_up(n, m):
    return ((n + m - 1) // m) * m


def mlp_kernel(x_ref, w1_ref, w2_ref, w3_ref, b_ref, o_ref):
    # fc1 + ReLU (K = in_features is tiny; MXU pads it, loads are lane-masked)
    h1 = jnp.dot(x_ref[...], w1_ref[...], preferred_element_type=jnp.float32)
    h1 = jnp.maximum(h1 + b_ref[0:1, :], 0.0)
    # fc2 + ReLU
    h2 = jnp.dot(h1, w2_ref[...], preferred_element_type=jnp.float32)
    h2 = jnp.maximum(h2 + b_ref[1:2, :], 0.0)
    # out layer (no activation) -> lane-dense [tile_b, 128] store
    y = jnp.dot(h2, w3_ref[...], preferred_element_type=jnp.float32) + b_ref[2:3, :]
    o_ref[...] = y.astype(o_ref.dtype)


@jax.jit
def mlp_forward(x, w1, b1, w2, b2, w3, b3):
    batch, in_features = x.shape
    h1 = w1.shape[1]
    h2 = w2.shape[1]
    out_features = w3.shape[1]

    # --- pad feature (lane) dims to 128 so every matmul output / store is lane-dense
    w1p = jnp.zeros((in_features, LANE), jnp.float32).at[:, :h1].set(w1)
    w2p = jnp.zeros((LANE, LANE), jnp.float32).at[:h1, :h2].set(w2)
    w3p = jnp.zeros((LANE, LANE), jnp.float32).at[:h2, :out_features].set(w3)
    # --- fuse the three biases into one resident [3, 128] buffer (single DMA)
    b_all = jnp.zeros((3, LANE), jnp.float32)
    b_all = b_all.at[0, :h1].set(b1.reshape(-1))
    b_all = b_all.at[1, :h2].set(b2.reshape(-1))
    b_all = b_all.at[2, :out_features].set(b3.reshape(-1))

    # --- batch tiling: pipeline x / out tiles over a 1-D parallel grid
    tile_b = min(MAX_TILE_B, _round_up(batch, 8))
    padded_batch = _round_up(batch, tile_b)
    if padded_batch != batch:
        x = jnp.pad(x, ((0, padded_batch - batch), (0, 0)))
    num_blocks = padded_batch // tile_b

    cost = pl.CostEstimate(
        flops=2 * batch * (in_features * h1 + h1 * h2 + h2 * out_features),
        transcendentals=0,
        bytes_accessed=4 * (x.size + padded_batch * LANE
                            + w1p.size + w2p.size + w3p.size + b_all.size),
    )

    y_pad = pl.pallas_call(
        mlp_kernel,
        out_shape=jax.ShapeDtypeStruct((padded_batch, LANE), jnp.float32),
        grid_spec=pl.GridSpec(
            grid=(num_blocks,),
            in_specs=[
                pl.BlockSpec((tile_b, in_features), lambda i: (i, 0)),  # streamed
                pl.BlockSpec((in_features, LANE), lambda i: (0, 0)),    # resident
                pl.BlockSpec((LANE, LANE), lambda i: (0, 0)),           # resident
                pl.BlockSpec((LANE, LANE), lambda i: (0, 0)),           # resident
                pl.BlockSpec((3, LANE), lambda i: (0, 0)),              # resident
            ],
            out_specs=pl.BlockSpec((tile_b, LANE), lambda i: (i, 0)),   # streamed
        ),
        compiler_params=pltpu.CompilerParams(
            dimension_semantics=("parallel",),
        ),
        cost_estimate=cost,
    )(x, w1p, w2p, w3p, b_all)

    return y_pad[:batch, :out_features]


def init_params(key, in_features=4, h1=8, h2=9, out_features=3):
    """Deterministic parameter init (PyTorch-style uniform fan-in bound).
    Weights stored [in, out] (transposed vs nn.Linear) so y = x @ W + b."""
    ks = jax.random.split(key, 6)

    def linear(kw, kb, fan_in, fan_out):
        bound = 1.0 / jnp.sqrt(fan_in)
        w = jax.random.uniform(kw, (fan_in, fan_out), jnp.float32, -bound, bound)
        b = jax.random.uniform(kb, (fan_out,), jnp.float32, -bound, bound)
        return w, b

    w1, b1 = linear(ks[0], ks[1], in_features, h1)
    w2, b2 = linear(ks[2], ks[3], h1, h2)
    w3, b3 = linear(ks[4], ks[5], h2, out_features)
    return w1, b1, w2, b2, w3, b3


def _reference(x, w1, b1, w2, b2, w3, b3):
    h = jnp.maximum(x @ w1 + b1, 0.0)
    h = jnp.maximum(h @ w2 + b2, 0.0)
    return h @ w3 + b3


if __name__ == "__main__":
    key = jax.random.PRNGKey(0)
    k_params, k_x1, k_x2 = jax.random.split(key, 3)

    in_features, h1, h2, out_features = 4, 8, 9, 3
    params = init_params(k_params, in_features, h1, h2, out_features)

    # Small-shape check (single grid step).
    batch = 8
    x = jax.random.normal(k_x1, (batch, in_features), jnp.float32)
    y = mlp_forward(x, *params)
    jax.block_until_ready(y)
    ref = _reference(x, *params)
    assert y.shape == (batch, out_features)
    assert jnp.allclose(y, ref, atol=1e-5, rtol=1e-5)

    # Larger batch exercises the multi-block pipelined grid (+ edge padding).
    batch2 = 1000
    x2 = jax.random.normal(k_x2, (batch2, in_features), jnp.float32)
    y2 = mlp_forward(x2, *params)
    jax.block_until_ready(y2)
    ref2 = _reference(x2, *params)
    assert y2.shape == (batch2, out_features)
    assert jnp.allclose(y2, ref2, atol=1e-5, rtol=1e-5)

    print("KERNEL_OK")
</pallas_src>

<mosaic_0001>
module attributes {stable_mosaic.version = 11 : i64} {
  func.func @mlp_kernel(%arg0: i32, %arg1: memref<8x4xf32, #tpu.memory_space<vmem>>, %arg2: memref<4x128xf32, #tpu.memory_space<vmem>>, %arg3: memref<128x128xf32, #tpu.memory_space<vmem>>, %arg4: memref<128x128xf32, #tpu.memory_space<vmem>>, %arg5: memref<3x128xf32, #tpu.memory_space<vmem>>, %arg6: memref<8x128xf32, #tpu.memory_space<vmem>>) attributes {dimension_semantics = [#tpu.dimension_semantics<parallel>], iteration_bounds = array<i64: 1>, scalar_prefetch = 0 : i64, scratch_operands = 0 : i64, tpu.core_type = #tpu.core_type<tc>, window_params = [{transform_indices = @transform_0, window_bounds = array<i64: 8, 4>}, {pipeline_mode = #tpu.pipeline_mode<synchronous>, transform_indices = @transform_1, window_bounds = array<i64: 4, 128>}, {pipeline_mode = #tpu.pipeline_mode<synchronous>, transform_indices = @transform_2, window_bounds = array<i64: 128, 128>}, {pipeline_mode = #tpu.pipeline_mode<synchronous>, transform_indices = @transform_3, window_bounds = array<i64: 128, 128>}, {pipeline_mode = #tpu.pipeline_mode<synchronous>, transform_indices = @transform_4, window_bounds = array<i64: 3, 128>}, {transform_indices = @transform_5, window_bounds = array<i64: 8, 128>}]} {
    %c0 = arith.constant 0 : index
    %c0_0 = arith.constant 0 : index
    %0 = vector.load %arg1[%c0, %c0_0] : memref<8x4xf32, #tpu.memory_space<vmem>>, vector<8x4xf32>
    %c0_1 = arith.constant 0 : index
    %c0_2 = arith.constant 0 : index
    %1 = vector.load %arg2[%c0_1, %c0_2] : memref<4x128xf32, #tpu.memory_space<vmem>>, vector<4x128xf32>
    %cst = arith.constant dense<0.000000e+00> : vector<8x128xf32>
    %2 = tpu.matmul %0, %1, %cst {dimension_numbers = #tpu.dot_dimension_numbers<[1], [0], [0], [1], [0, 0, 1, 1], [], []>} : vector<8x4xf32>, vector<4x128xf32>, vector<8x128xf32> -> vector<8x128xf32>
    %c0_3 = arith.constant 0 : index
    %c0_4 = arith.constant 0 : index
    %3 = vector.load %arg5[%c0_3, %c0_4] : memref<3x128xf32, #tpu.memory_space<vmem>>, vector<1x128xf32>
    %4 = vector.broadcast %3 : vector<1x128xf32> to vector<8x128xf32>
    %5 = arith.addf %2, %4 : vector<8x128xf32>
    %cst_5 = arith.constant 0.000000e+00 : f32
    %6 = vector.broadcast %cst_5 : f32 to vector<8x128xf32>
    %7 = arith.maximumf %5, %6 : vector<8x128xf32>
    %c0_6 = arith.constant 0 : index
    %c0_7 = arith.constant 0 : index
    %8 = vector.load %arg3[%c0_6, %c0_7] : memref<128x128xf32, #tpu.memory_space<vmem>>, vector<128x128xf32>
    %cst_8 = arith.constant dense<0.000000e+00> : vector<8x128xf32>
    %9 = tpu.matmul %7, %8, %cst_8 {dimension_numbers = #tpu.dot_dimension_numbers<[1], [0], [0], [1], [0, 0, 1, 1], [], []>} : vector<8x128xf32>, vector<128x128xf32>, vector<8x128xf32> -> vector<8x128xf32>
    %c1 = arith.constant 1 : index
    %c0_9 = arith.constant 0 : index
    %10 = vector.load %arg5[%c1, %c0_9] : memref<3x128xf32, #tpu.memory_space<vmem>>, vector<1x128xf32>
    %11 = vector.broadcast %10 : vector<1x128xf32> to vector<8x128xf32>
    %12 = arith.addf %9, %11 : vector<8x128xf32>
    %cst_10 = arith.constant 0.000000e+00 : f32
    %13 = vector.broadcast %cst_10 : f32 to vector<8x128xf32>
    %14 = arith.maximumf %12, %13 : vector<8x128xf32>
    %c0_11 = arith.constant 0 : index
    %c0_12 = arith.constant 0 : index
    %15 = vector.load %arg4[%c0_11, %c0_12] : memref<128x128xf32, #tpu.memory_space<vmem>>, vector<128x128xf32>
    %cst_13 = arith.constant dense<0.000000e+00> : vector<8x128xf32>
    %16 = tpu.matmul %14, %15, %cst_13 {dimension_numbers = #tpu.dot_dimension_numbers<[1], [0], [0], [1], [0, 0, 1, 1], [], []>} : vector<8x128xf32>, vector<128x128xf32>, vector<8x128xf32> -> vector<8x128xf32>
    %c2 = arith.constant 2 : index
    %c0_14 = arith.constant 0 : index
    %17 = vector.load %arg5[%c2, %c0_14] : memref<3x128xf32, #tpu.memory_space<vmem>>, vector<1x128xf32>
    %18 = vector.broadcast %17 : vector<1x128xf32> to vector<8x128xf32>
    %19 = arith.addf %16, %18 : vector<8x128xf32>
    %c0_15 = arith.constant 0 : index
    %c0_16 = arith.constant 0 : index
    %20 = vector.load %arg6[%c0_15, %c0_16] : memref<8x128xf32, #tpu.memory_space<vmem>>, vector<8x128xf32>
    tpu.vector_store %arg6[%c0_15, %c0_16], %19 {strides = array<i32>} : memref<8x128xf32, #tpu.memory_space<vmem>>, vector<8x128xf32>,
    return
  }
  func.func @transform_0(%arg0: i32) -> (i32, i32) {
    %c0_i32 = arith.constant 0 : i32
    %c0_i32_0 = arith.constant 0 : i32
    return %arg0, %c0_i32 : i32, i32
  }
  func.func @transform_1(%arg0: i32) -> (i32, i32) {
    %c0_i32 = arith.constant 0 : i32
    %c0_i32_0 = arith.constant 0 : i32
    %c0_i32_1 = arith.constant 0 : i32
    return %c0_i32, %c0_i32_0 : i32, i32
  }
  func.func @transform_2(%arg0: i32) -> (i32, i32) {
    %c0_i32 = arith.constant 0 : i32
    %c0_i32_0 = arith.constant 0 : i32
    %c0_i32_1 = arith.constant 0 : i32
    return %c0_i32, %c0_i32_0 : i32, i32
  }
  func.func @transform_3(%arg0: i32) -> (i32, i32) {
    %c0_i32 = arith.constant 0 : i32
    %c0_i32_0 = arith.constant 0 : i32
    %c0_i32_1 = arith.constant 0 : i32
    return %c0_i32, %c0_i32_0 : i32, i32
  }
  func.func @transform_4(%arg0: i32) -> (i32, i32) {
    %c0_i32 = arith.constant 0 : i32
    %c0_i32_0 = arith.constant 0 : i32
    %c0_i32_1 = arith.constant 0 : i32
    return %c0_i32, %c0_i32_0 : i32, i32
  }
  func.func @transform_5(%arg0: i32) -> (i32, i32) {
    %c0_i32 = arith.constant 0 : i32
    %c0_i32_0 = arith.constant 0 : i32
    return %arg0, %c0_i32 : i32, i32
  }
}

</mosaic_0001>

<bundles_post_ra>
// kernel: mlp_forward.1
= control target key start
LH: loop header
LB: loop body
LE: loop exit
PB: predicated region body
PF: predicated region fallthrough
CT: control target
= control target key end

     0   :  { %vm31_vm0 = vcmask 1043456   ;;  %vm27_vm1 = vcmask 31744   ;;  %v461_v0 = vmov 0.0   ;;  %vm462_vm2 = vmmov 0   ;;  %s624_s1 = inlined_call_operand.vmem [shape: f32[4,128], index: 1, kind: input, shape index: {}]   ;;  %s625_s0 = inlined_call_operand.vmem [shape: f32[8,4], index: 0, kind: input, shape index: {}]   ;;  %s626_s2 = inlined_call_operand.vmem [shape: f32[128,128], index: 2, kind: input, shape index: {}]   ;;  %s627_s3 = inlined_call_operand.vmem [shape: f32[128,128], index: 3, kind: input, shape index: {}]   ;;  %s628_s4 = inlined_call_operand.vmem [shape: f32[3,128], index: 4, kind: input, shape index: {}]   ;;  %s629_s5 = inlined_call_operand.vmem [shape: f32[8,128], index: 5, kind: output, shape index: {}]  }
   0x1   :  { %335 = vmatprep.subr.mxu0 %v461_v0  ;;  %v21_v1 = vld [vmem:[%s624_s1] sm:$0xf]  ;;  %337 = vmatprep.mubr.msk.f32.mxu0 %vm462_vm2, %v461_v0  ;;  %v463_v4 = vmov 0.0|0.0   ;;  %v107_v5 = vld [vmem:[%s626_s2 + $0x8] sm:$0xff]  ;;  %v108_v6 = vld [vmem:[%s626_s2 + $0x10] sm:$0xff] }
   0x2   :  { %v20_v2 = vld [vmem:[%s625_s0] sm:$0xff]  ;;  %336 = vmatpush3.msk.msra.mxu0 %vm31_vm0, %v21_v1  ;;  %410 = vmatprep.subr.bf16.mxu1 %v463_v4  ;;  %v109_v7 = vld [vmem:[%s626_s2 + $0x18] sm:$0xff]  ;;  %v111_v11 = vld [vmem:[%s626_s2 + $0x28] sm:$0xff] }
   0x3   :  { %v106_v3 = vld [vmem:[%s626_s2] sm:$0xff]  ;;  %338 = vmatmul.mubr.msk.f32.vlgmr.msra.gmra.mrb[0].mxu0 %vm27_vm1, %v20_v2  ;;  %372 = vmatprep.mubr.msk.f32.mxu1 %vm462_vm2, %v461_v0  ;;  %v414_v9 = vpack.c.bf16 %v109_v7, %v108_v6  ;;  %v112_v13 = vld [vmem:[%s626_s2 + $0x30] sm:$0xff]  ;;  %v113_v14 = vld [vmem:[%s626_s2 + $0x38] sm:$0xff] }
   0x4   :  { %v411_v8 = vpack.c.bf16 %v107_v5, %v106_v3  ;;  %434 = vmatprep.subr.bf16.mxu0 %v463_v4  ;;  %407 = vmatprep.mubr.msk.f32.mxu0 %vm462_vm2, %v461_v0  ;;  %v110_v10 = vld [vmem:[%s626_s2 + $0x20] sm:$0xff]  ;;  %v420_v15 = vpack.c.bf16 %v113_v14, %v112_v13  ;;  %v115_v17 = vld [vmem:[%s626_s2 + $0x48] sm:$0xff]  ;;  %v116_v19 = vld [vmem:[%s626_s2 + $0x50] sm:$0xff] }
   0x5   :  { %v417_v12 = vpack.c.bf16 %v111_v11, %v110_v10  ;;  %v114_v16 = vld [vmem:[%s626_s2 + $0x40] sm:$0xff]  ;;  %v117_v20 = vld [vmem:[%s626_s2 + $0x58] sm:$0xff]  ;;  %v119_v23 = vld [vmem:[%s626_s2 + $0x68] sm:$0xff] }
   0x6   :  { %412 = vmatpush3.bf16.msra.mxu1 %v411_v8  ;;  %v423_v18 = vpack.c.bf16 %v115_v17, %v114_v16  ;;  %v426_v21 = vpack.c.bf16 %v117_v20, %v116_v19  ;;  %v118_v22 = vld [vmem:[%s626_s2 + $0x60] sm:$0xff]  ;;  %v120_v25 = vld [vmem:[%s626_s2 + $0x70] sm:$0xff]  ;;  %v121_v26 = vld [vmem:[%s626_s2 + $0x78] sm:$0xff] }
   0x7   :  { %413 = vmatprep.subr.bf16.mxu1 %v463_v4  ;;  %v429_v24 = vpack.c.bf16 %v119_v23, %v118_v22  ;;  %v432_v27 = vpack.c.bf16 %v121_v26, %v120_v25  ;;  %v198_v28 = vld [vmem:[%s627_s3] sm:$0xff]  ;;  %v199_v29 = vld [vmem:[%s627_s3 + $0x8] sm:$0xff]  ;;  %v200_v30 = vld [vmem:[%s627_s3 + $0x10] sm:$0xff] }
   0x8   :  { %v435_v31 = vpack.c.bf16 %v199_v29, %v198_v28  ;;  %v201_v32 = vld [vmem:[%s627_s3 + $0x18] sm:$0xff]  ;;  %v202_v34 = vld [vmem:[%s627_s3 + $0x20] sm:$0xff]  ;;  %v203_v35 = vld [vmem:[%s627_s3 + $0x28] sm:$0xff] }
   0x9   :  { %v438_v33 = vpack.c.bf16 %v201_v32, %v200_v30  ;;  %v441_v36 = vpack.c.bf16 %v203_v35, %v202_v34  ;;  %v204_v37 = vld [vmem:[%s627_s3 + $0x30] sm:$0xff]  ;;  %v205_v38 = vld [vmem:[%s627_s3 + $0x38] sm:$0xff]  ;;  %v206_v40 = vld [vmem:[%s627_s3 + $0x40] sm:$0xff] }
   0xa   :  { %415 = vmatpush3.bf16.msra.mxu1 %v414_v9  ;;  %436 = vmatpush3.bf16.msra.mxu0 %v435_v31  ;;  %v444_v39 = vpack.c.bf16 %v205_v38, %v204_v37  ;;  %v207_v41 = vld [vmem:[%s627_s3 + $0x48] sm:$0xff]  ;;  %v208_v43 = vld [vmem:[%s627_s3 + $0x50] sm:$0xff]  ;;  %v209_v44 = vld [vmem:[%s627_s3 + $0x58] sm:$0xff] }
   0xb   :  { %416 = vmatprep.subr.bf16.mxu1 %v463_v4  ;;  %437 = vmatprep.subr.bf16.mxu0 %v463_v4  ;;  %v447_v42 = vpack.c.bf16 %v207_v41, %v206_v40  ;;  %v450_v45 = vpack.c.bf16 %v209_v44, %v208_v43  ;;  %v210_v46 = vld [vmem:[%s627_s3 + $0x60] sm:$0xff]  ;;  %v211_v47 = vld [vmem:[%s627_s3 + $0x68] sm:$0xff]  ;;  %v212_v54 = vld [vmem:[%s627_s3 + $0x70] sm:$0xff] }
   0xc   :  { %v453_v48 = vpack.c.bf16 %v211_v47, %v210_v46  ;;  %v294_v49 = vld [vmem:[%s628_s4] ss:$0 sm:$0xff]  ;;  %v213_v55 = vld [vmem:[%s627_s3 + $0x78] sm:$0xff]  ;;  %v297_v57 = vld [vmem:[%s628_s4 + $0x1] ss:$0 sm:$0xff] }
   0xd   :  { %v456_v56 = vpack.c.bf16 %v213_v55, %v212_v54  ;;  %v298_v62 = vld [vmem:[%s628_s4 + $0x2] ss:$0 sm:$0xff] }
   0xe   :  { %418 = vmatpush3.bf16.msra.mxu1 %v417_v12  ;;  %439 = vmatpush3.bf16.msra.mxu0 %v438_v33 }
   0xf   :  { %419 = vmatprep.subr.bf16.mxu1 %v463_v4  ;;  %440 = vmatprep.subr.bf16.mxu0 %v463_v4 }
  0x12   :  { %421 = vmatpush3.bf16.msra.mxu1 %v420_v15  ;;  %442 = vmatpush3.bf16.msra.mxu0 %v441_v36 }
  0x13   :  { %422 = vmatprep.subr.bf16.mxu1 %v463_v4  ;;  %443 = vmatprep.subr.bf16.mxu0 %v463_v4 }
  0x16   :  { %424 = vmatpush3.bf16.msra.mxu1 %v423_v18  ;;  %445 = vmatpush3.bf16.msra.mxu0 %v444_v39 }
  0x17   :  { %425 = vmatprep.subr.bf16.mxu1 %v463_v4  ;;  %446 = vmatprep.subr.bf16.mxu0 %v463_v4 }
  0x1a   :  { %427 = vmatpush3.bf16.msra.mxu1 %v426_v21  ;;  %448 = vmatpush3.bf16.msra.mxu0 %v447_v42 }
  0x1b   :  { %428 = vmatprep.subr.bf16.mxu1 %v463_v4  ;;  %449 = vmatprep.subr.bf16.mxu0 %v463_v4 }
  0x1e   :  { %430 = vmatpush3.bf16.msra.mxu1 %v429_v24  ;;  %451 = vmatpush3.bf16.msra.mxu0 %v450_v45 }
  0x1f   :  { %431 = vmatprep.subr.bf16.mxu1 %v463_v4  ;;  %452 = vmatprep.subr.bf16.mxu0 %v463_v4 }
  0x22   :  { %433 = vmatpush3.bf16.msra.mxu1 %v432_v27  ;;  %454 = vmatpush3.bf16.msra.mxu0 %v453_v48 }
  0x23   :  { %455 = vmatprep.subr.bf16.mxu0 %v463_v4 }
  0x26   :  { %457 = vmatpush3.bf16.msra.mxu0 %v456_v56 }
  0xd6   :  { %v101_v50 = vpop.f32.mrb[0].mxu0 }
  0xd7   :  { %v102_v51 = vadd.f32 %v294_v49, %v101_v50  ;;  %v339_v52 = vpop.f32.mrb[1].mxu0 }
  0xd9   :  { %v105_v53 = vmax.f32 %v102_v51, 0.0 }
  0xdb   :  { %373 = vmatmul.mubr.f32.vlgmr.msra.gmra.mrb[0].mxu1 %v105_v53 }
 0x1ae   :  { %v193_v58 = vpop.f32.mrb[0].mxu1 }
 0x1af   :  { %v194_v59 = vadd.f32 %v297_v57, %v193_v58  ;;  %v374_v60 = vpop.f32.mrb[1].mxu1 }
 0x1b1   :  { %v197_v61 = vmax.f32 %v194_v59, 0.0 }
 0x1b3   :  { %408 = vmatmul.mubr.f32.vlgmr.msra.gmra.mrb[2].mxu0 %v197_v61 }
 0x286   :  { %v285_v63 = vpop.f32.mrb[2].mxu0 }
 0x287   :  { %v286_v0 = vadd.f32 %v298_v62, %v285_v63  ;;  %v409_v1 = vpop.f32.mrb[3].mxu0 }
 0x289   :  { %289 = vst [vmem:[%s629_s5] sm:$0xff] %v286_v0 }

</bundles_post_ra>
